<compile_context>
chip_gen: v7x
topology: tpu7x:2x2x1
jax: 0.10.0
libtpu: 0.0.40
codegen_flags: <defaults>
</compile_context>

<pallas_src>
import jax
import jax.numpy as jnp
from jax.experimental import pallas as pl
from jax.experimental.pallas import tpu as pltpu


def _hw_params():
    """Generation-aware tile / VMEM-limit / grid-splitting parameters."""
    try:
        kind = jax.devices()[0].device_kind.lower()
    except Exception:
        kind = ""
    if "v7" in kind or "tpu7" in kind:
        # v7x: 64 MiB physical VMEM, 2 TensorCores sharing HBM -> >= 2 blocks.
        return dict(target_tile_bytes=2 << 20, vmem_limit_bytes=32 << 20,
                    min_grid_steps=2)
    if "v6" in kind or "v5" in kind or "v4" in kind:
        # 128 MiB VMEM generations, single TensorCore per chip.
        return dict(target_tile_bytes=4 << 20, vmem_limit_bytes=64 << 20,
                    min_grid_steps=1)
    # Unknown chip: conservative sizing that is safe everywhere.
    return dict(target_tile_bytes=2 << 20, vmem_limit_bytes=32 << 20,
                min_grid_steps=1)


def _sublane_multiple(itemsize):
    # One vreg sublane group holds 8 x 32-bit rows: 8 f32, 16 bf16, 32 int8.
    return max(8, 32 // int(itemsize))


def _choose_row_tile(batch, row_bytes, itemsize, target_tile_bytes,
                     min_grid_steps):
    """Rows per block: ~target_tile_bytes, multiple of sublane packing (or == batch)."""
    sub = _sublane_multiple(itemsize)
    rows = max(1, target_tile_bytes // max(int(row_bytes), 1))
    if min_grid_steps > 1 and batch > sub:
        # Never emit a single-block launch on dual-TC chips.
        cap = max(sub, (pl.cdiv(batch, min_grid_steps) // sub) * sub)
        rows = min(rows, cap)
    if rows >= batch:
        return batch
    rows = max(sub, (rows // sub) * sub)
    return min(rows, batch)


def _make_radix_softmax_kernel(radix, cardinality, inner):
    group_w_in = radix * inner          # width of one cardinality group (input layout)
    group_w_out = cardinality * inner   # width of one radix group (output layout)

    def kernel(x_ref, o_ref):
        # x_ref / o_ref: (Bt, C), C = cardinality * radix * inner.
        #   input column  (g, r, i) -> g*radix*inner + r*inner + i
        #   output column (r, g, i) -> r*cardinality*inner + g*inner + i
        for g in range(cardinality):
            base = g * group_w_in
            # Static ref slices: no concatenation, no (Bt, C) f32 temporaries.
            slabs = [
                x_ref[:, base + r * inner: base + (r + 1) * inner].astype(jnp.float32)
                for r in range(radix)
            ]
            m = slabs[0]
            for r in range(1, radix):
                m = jnp.maximum(m, slabs[r])
            exps = [jnp.exp(s - m) for s in slabs]
            denom = exps[0]
            for r in range(1, radix):
                denom = denom + exps[r]
            inv = pl.reciprocal(denom, approx=False)   # exact; still HBM-bound
            for r in range(radix):
                start = r * group_w_out + g * inner
                o_ref[:, start: start + inner] = (exps[r] * inv).astype(o_ref.dtype)

    return kernel


def _sigmoid_kernel(x_ref, o_ref):
    x = x_ref[...].astype(jnp.float32)
    # sigmoid(x) = 0.5 * (tanh(x/2) + 1): one EUP transcendental per element.
    o_ref[...] = (0.5 * (jnp.tanh(0.5 * x) + 1.0)).astype(o_ref.dtype)


def _pick_lane_width(total):
    """Largest multiple of 128 (<= 4096) dividing total, or None."""
    for w in (4096, 2048, 1024, 512, 256, 128):
        if total % w == 0:
            return w
    return None


def _elementwise_call(kernel, x2d, hw):
    rows, width = x2d.shape
    itemsize = jnp.dtype(x2d.dtype).itemsize
    bt = _choose_row_tile(rows, width * itemsize, itemsize,
                          hw["target_tile_bytes"], hw["min_grid_steps"])
    grid = (pl.cdiv(rows, bt),)
    return pl.pallas_call(
        kernel,
        out_shape=jax.ShapeDtypeStruct((rows, width), x2d.dtype),
        grid_spec=pltpu.PrefetchScalarGridSpec(
            num_scalar_prefetch=0,
            grid=grid,
            # If a profile ever shows inbound-DMA gaps, sweep
            # pipeline_mode=pl.Buffered(3) here (costs one extra tile of VMEM).
            in_specs=[pl.BlockSpec((bt, width), lambda i: (i, 0))],
            out_specs=pl.BlockSpec((bt, width), lambda i: (i, 0)),
        ),
        compiler_params=pltpu.CompilerParams(
            dimension_semantics=("parallel",),
            vmem_limit_bytes=hw["vmem_limit_bytes"],
        ),
    )(x2d)


def radix_softmax(x, radix, cardinality):
    """Pallas implementation of RadixSoftmax.forward."""
    hw = _hw_params()
    batch = x.shape[0]

    if radix > 1:
        x_flat = x.reshape(batch, -1)                 # free reshape, no transpose
        c = x_flat.shape[1]
        if c % (radix * cardinality) != 0:
            raise ValueError(
                f"RadixSoftmax: channel dim {c} is not divisible by "
                f"radix*cardinality = {radix * cardinality}")
        inner = c // (radix * cardinality)
        itemsize = jnp.dtype(x.dtype).itemsize
        bt = _choose_row_tile(batch, c * itemsize, itemsize,
                              hw["target_tile_bytes"], hw["min_grid_steps"])
        kernel = _make_radix_softmax_kernel(radix, cardinality, inner)
        out = pl.pallas_call(
            kernel,
            out_shape=jax.ShapeDtypeStruct((batch, c), x.dtype),
            grid_spec=pltpu.PrefetchScalarGridSpec(
                num_scalar_prefetch=0,
                grid=(pl.cdiv(batch, bt),),
                in_specs=[pl.BlockSpec((bt, c), lambda i: (i, 0))],
                out_specs=pl.BlockSpec((bt, c), lambda i: (i, 0)),
            ),
            compiler_params=pltpu.CompilerParams(
                dimension_semantics=("parallel",),
                vmem_limit_bytes=hw["vmem_limit_bytes"],
            ),
        )(x_flat)
        return out                                    # (batch, C), transposed layout

    # radix == 1: plain sigmoid, original shape preserved.
    total = x.size
    w = _pick_lane_width(total)
    if w is not None:
        x2d = x.reshape(total // w, w)                # lane-dense, unmasked stores
    else:
        x2d = x.reshape(batch, -1)                    # fallback (masked last-dim stores)
    out = _elementwise_call(_sigmoid_kernel, x2d, hw)
    return out.reshape(x.shape)


def _reference(x, radix, cardinality):
    batch = x.shape[0]
    if radix > 1:
        xr = x.reshape(batch, cardinality, radix, -1)
        xr = jnp.transpose(xr, (0, 2, 1, 3))
        xr = jax.nn.softmax(xr.astype(jnp.float32), axis=1).astype(x.dtype)
        return xr.reshape(batch, -1)
    return jax.nn.sigmoid(x.astype(jnp.float32)).astype(x.dtype)


if __name__ == "__main__":
    key = jax.random.PRNGKey(0)
    k1, k2, k3, k4, k5 = jax.random.split(key, 5)

    # 1) radix > 1, lane-aligned inner: radix=2, card=2, inner=128, f32
    radix, card, inner = 2, 2, 128
    B = 16
    C = radix * card * inner
    x = jax.random.normal(k1, (B, C, 1, 1), dtype=jnp.float32)
    out = jax.block_until_ready(radix_softmax(x, radix, card))
    ref = _reference(x, radix, card)
    assert out.shape == (B, C), out.shape
    assert jnp.allclose(out, ref, atol=2e-3, rtol=2e-3), \
        float(jnp.max(jnp.abs(out - ref)))

    # 2) radix > 1, cardinality=1, non-lane-aligned inner: radix=4, card=1, inner=32
    radix2, card2, inner2 = 4, 1, 32
    B2 = 8
    C2 = radix2 * card2 * inner2
    x2 = jax.random.normal(k2, (B2, C2, 1, 1), dtype=jnp.float32)
    out2 = jax.block_until_ready(radix_softmax(x2, radix2, card2))
    ref2 = _reference(x2, radix2, card2)
    assert out2.shape == (B2, C2), out2.shape
    assert jnp.allclose(out2, ref2, atol=2e-3, rtol=2e-3), \
        float(jnp.max(jnp.abs(out2 - ref2)))

    # 3) radix == 1: sigmoid, (B, C, 1, 1) with C not divisible by 128 (fallback path)
    x3 = jax.random.normal(k3, (2, 96, 1, 1), dtype=jnp.float32)
    out3 = jax.block_until_ready(radix_softmax(x3, 1, card))
    ref3 = _reference(x3, 1, card)
    assert out3.shape == x3.shape, out3.shape
    assert jnp.allclose(out3, ref3, atol=2e-3, rtol=2e-3), \
        float(jnp.max(jnp.abs(out3 - ref3)))

    # 4) radix == 1: sigmoid, element count divisible by 128 (lane-dense path)
    x4 = jax.random.normal(k4, (4, 256, 1, 1), dtype=jnp.float32)
    out4 = jax.block_until_ready(radix_softmax(x4, 1, card))
    ref4 = _reference(x4, 1, card)
    assert out4.shape == x4.shape, out4.shape
    assert jnp.allclose(out4, ref4, atol=2e-3, rtol=2e-3), \
        float(jnp.max(jnp.abs(out4 - ref4)))

    # 5) radix > 1, bf16 input (exercises dtype-aware sublane tiling)
    radix5, card5, inner5 = 2, 1, 128
    B5 = 32
    C5 = radix5 * card5 * inner5
    x5 = jax.random.normal(k5, (B5, C5, 1, 1), dtype=jnp.float32).astype(jnp.bfloat16)
    out5 = jax.block_until_ready(radix_softmax(x5, radix5, card5))
    ref5 = _reference(x5, radix5, card5)
    assert out5.shape == (B5, C5), out5.shape
    assert jnp.allclose(out5.astype(jnp.float32), ref5.astype(jnp.float32),
                        atol=1.5e-2, rtol=1.5e-2), \
        float(jnp.max(jnp.abs(out5.astype(jnp.float32) - ref5.astype(jnp.float32))))

    print("KERNEL_OK")
</pallas_src>

<mosaic_0001>
module attributes {stable_mosaic.version = 11 : i64} {
  func.func @kernel(%arg0: i32, %arg1: memref<16x512xf32, #tpu.memory_space<vmem>>, %arg2: memref<16x512xf32, #tpu.memory_space<vmem>>) attributes {dimension_semantics = [#tpu.dimension_semantics<parallel>], iteration_bounds = array<i64: 1>, scalar_prefetch = 0 : i64, scratch_operands = 0 : i64, tpu.core_type = #tpu.core_type<tc>, window_params = [{transform_indices = @transform_0, window_bounds = array<i64: 16, 512>}, {transform_indices = @transform_1, window_bounds = array<i64: 16, 512>}]} {
    %c0 = arith.constant 0 : index
    %c0_0 = arith.constant 0 : index
    %0 = vector.load %arg1[%c0, %c0_0] : memref<16x512xf32, #tpu.memory_space<vmem>>, vector<16x128xf32>
    %c0_1 = arith.constant 0 : index
    %c128 = arith.constant 128 : index
    %1 = vector.load %arg1[%c0_1, %c128] : memref<16x512xf32, #tpu.memory_space<vmem>>, vector<16x128xf32>
    %2 = arith.maximumf %0, %1 : vector<16x128xf32>
    %3 = arith.subf %0, %2 : vector<16x128xf32>
    %4 = math.exp %3 : vector<16x128xf32>
    %5 = arith.subf %1, %2 : vector<16x128xf32>
    %6 = math.exp %5 : vector<16x128xf32>
    %7 = arith.addf %4, %6 : vector<16x128xf32>
    %8 = tpu.reciprocal %7 : vector<16x128xf32> -> vector<16x128xf32>
    %9 = arith.mulf %4, %8 : vector<16x128xf32>
    %c0_2 = arith.constant 0 : index
    %c0_3 = arith.constant 0 : index
    %10 = vector.load %arg2[%c0_2, %c0_3] : memref<16x512xf32, #tpu.memory_space<vmem>>, vector<16x128xf32>
    tpu.vector_store %arg2[%c0_2, %c0_3], %9 {strides = array<i32>} : memref<16x512xf32, #tpu.memory_space<vmem>>, vector<16x128xf32>,
    %11 = arith.mulf %6, %8 : vector<16x128xf32>
    %c0_4 = arith.constant 0 : index
    %c256 = arith.constant 256 : index
    %12 = vector.load %arg2[%c0_4, %c256] : memref<16x512xf32, #tpu.memory_space<vmem>>, vector<16x128xf32>
    tpu.vector_store %arg2[%c0_4, %c256], %11 {strides = array<i32>} : memref<16x512xf32, #tpu.memory_space<vmem>>, vector<16x128xf32>,
    %c0_5 = arith.constant 0 : index
    %c256_6 = arith.constant 256 : index
    %13 = vector.load %arg1[%c0_5, %c256_6] : memref<16x512xf32, #tpu.memory_space<vmem>>, vector<16x128xf32>
    %c0_7 = arith.constant 0 : index
    %c384 = arith.constant 384 : index
    %14 = vector.load %arg1[%c0_7, %c384] : memref<16x512xf32, #tpu.memory_space<vmem>>, vector<16x128xf32>
    %15 = arith.maximumf %13, %14 : vector<16x128xf32>
    %16 = arith.subf %13, %15 : vector<16x128xf32>
    %17 = math.exp %16 : vector<16x128xf32>
    %18 = arith.subf %14, %15 : vector<16x128xf32>
    %19 = math.exp %18 : vector<16x128xf32>
    %20 = arith.addf %17, %19 : vector<16x128xf32>
    %21 = tpu.reciprocal %20 : vector<16x128xf32> -> vector<16x128xf32>
    %22 = arith.mulf %17, %21 : vector<16x128xf32>
    %c0_8 = arith.constant 0 : index
    %c128_9 = arith.constant 128 : index
    %23 = vector.load %arg2[%c0_8, %c128_9] : memref<16x512xf32, #tpu.memory_space<vmem>>, vector<16x128xf32>
    tpu.vector_store %arg2[%c0_8, %c128_9], %22 {strides = array<i32>} : memref<16x512xf32, #tpu.memory_space<vmem>>, vector<16x128xf32>,
    %24 = arith.mulf %19, %21 : vector<16x128xf32>
    %c0_10 = arith.constant 0 : index
    %c384_11 = arith.constant 384 : index
    %25 = vector.load %arg2[%c0_10, %c384_11] : memref<16x512xf32, #tpu.memory_space<vmem>>, vector<16x128xf32>
    tpu.vector_store %arg2[%c0_10, %c384_11], %24 {strides = array<i32>} : memref<16x512xf32, #tpu.memory_space<vmem>>, vector<16x128xf32>,
    return
  }
  func.func @transform_0(%arg0: i32) -> (i32, i32) {
    %c0_i32 = arith.constant 0 : i32
    %c0_i32_0 = arith.constant 0 : i32
    return %arg0, %c0_i32 : i32, i32
  }
  func.func @transform_1(%arg0: i32) -> (i32, i32) {
    %c0_i32 = arith.constant 0 : i32
    %c0_i32_0 = arith.constant 0 : i32
    return %arg0, %c0_i32 : i32, i32
  }
}

</mosaic_0001>

<bundles_post_ra>
// kernel: tpu_custom_call.1
= control target key start
LH: loop header
LB: loop body
LE: loop exit
PB: predicated region body
PF: predicated region fallthrough
CT: control target
= control target key end

     0   :  { %6 = vsyncpa [#allocation3], 0  ;;  %s220_s0 = inlined_call_operand.hbm [shape: f32[16,512], index: 0, kind: input, shape index: {}]   ;;  %s221_s1 = inlined_call_operand.hbm [shape: f32[16,512], index: 1, kind: output, shape index: {}]  }
   0x1   :  { %7 = vsyncpa [#allocation4], 0  ;;  %s176_s6 = smov [#allocation2]   ;;  %s128_s10 = scalar_lea.hbm %s220_s0, 1024 }
   0x2   :  { %s13_s7 = sshll.u32 %s176_s6, 4  ;;  %p129_p0 = scmp.ne.s32.totalorder %s220_s0, %s128_s10  ;;  %s14_s7 = int_to_ptr.vmem [resolvable:$true] %s13_s7 }
   0x3   :  { %p132_p1 = scmp.lt.u32.totalorder %s128_s10, %s220_s0 }
   0x5   :  { %p134_p2 = pnand %p132_p1, %p129_p0 }
   0x7   :  { %137 = shalt.err (!%p134_p2)
}
   0x8   :  { %s138_s15 = scalar_lea.vmem %s14_s7, 1024  ;;  %p143_p4 = scmp.lt.s32.totalorder %s14_s7, %s14_s7 }
   0x9   :  { %p139_p3 = scmp.ne.s32.totalorder %s14_s7, %s138_s15  ;;  %p144_p5 = scmp.lt.s32.totalorder %s138_s15, %s138_s15 }
   0xb   :  { %p145_p6 = por %p144_p5, %p143_p4 }
   0xd   :  { %p146_p7 = pnand %p145_p6, %p139_p3 }
   0xf   :  { %149 = shalt.err (!%p146_p7)
}
  0x10   :  { %s177_s16 = smov 512   ;;  %s178_s17 = smov 32  }
  0x11   :  { %19 = dma.hbm_to_vmem [thread:$0]  %s220_s0, 1024, %s14_s7, [#allocation3], %s177_s16, %s177_s16, %s178_s17  }
  0x12   :  { %172 = dma.done.wait [#allocation3], 1024  }
  0x13   :  { %173 = vsyncadd [#allocation3], 4294966272  ;;  %v23_v0 = vld [vmem:[#allocation2] sm:$0xff]  ;;  %v25_v1 = vld [vmem:[#allocation2 + $0x8] sm:$0xff]  ;;  %s179_s0 = smov [#allocation5]  }
  0x14   :  { %v24_v2 = vld [vmem:[#allocation2 + $0x20] sm:$0xff]  ;;  %v27_v3 = vmax.f32 %v23_v0, %v25_v1  ;;  %v26_v4 = vld [vmem:[#allocation2 + $0x28] sm:$0xff]  ;;  %v53_v5 = vld [vmem:[#allocation2 + $0x10] sm:$0xff]  ;;  %s88_s20 = sshll.u32 %s179_s0, 4  ;;  %s89_s20 = int_to_ptr.vmem [resolvable:$true] %s88_s20 }
  0x15   :  { %v55_v6 = vld [vmem:[#allocation2 + $0x18] sm:$0xff]  ;;  %v28_v7 = vmax.f32 %v24_v2, %v26_v4  ;;  %v54_v9 = vld [vmem:[#allocation2 + $0x30] sm:$0xff]  ;;  %s150_s21 = scalar_lea.vmem %s89_s20, 1024  ;;  %p155_p9 = scmp.lt.s32.totalorder %s89_s20, %s89_s20 }
  0x16   :  { %v57_v8 = vmax.f32 %v53_v5, %v55_v6  ;;  %v56_v10 = vld [vmem:[#allocation2 + $0x38] sm:$0xff]  ;;  %v29_v11 = vsub.f32 %v23_v0, %v27_v3  ;;  %v35_v12 = vsub.f32 %v25_v1, %v27_v3  ;;  %p151_p8 = scmp.ne.s32.totalorder %s89_s20, %s150_s21  ;;  %p156_p10 = scmp.lt.s32.totalorder %s150_s21, %s150_s21 }
  0x17   :  { %v58_v13 = vmax.f32 %v54_v9, %v56_v10  ;;  %v30_v14 = vsub.f32 %v24_v2, %v28_v7  ;;  %v36_v15 = vsub.f32 %v26_v4, %v28_v7 }
  0x18   :  { %v59_v16 = vsub.f32 %v53_v5, %v57_v8  ;;  %v65_v17 = vsub.f32 %v55_v6, %v57_v8  ;;  %v31_v18 = vmul.f32 1.442695, %v29_v11  ;;  %v37_v19 = vmul.f32 1.442695, %v35_v12  ;;  %p157_p11 = por %p156_p10, %p155_p9 }
  0x19   :  { %v60_v20 = vsub.f32 %v54_v9, %v58_v13  ;;  %v33_v21 = vmul.f32 1.442695, %v30_v14  ;;  %v39_v22 = vmul.f32 1.442695, %v36_v15  ;;  %v66_v23 = vsub.f32 %v56_v10, %v58_v13 }
  0x1a   :  { %104 = vpow2.f32 %v31_v18  ;;  %v61_v24 = vmul.f32 1.442695, %v59_v16  ;;  %v67_v25 = vmul.f32 1.442695, %v65_v17  ;;  %p158_p12 = pnand %p157_p11, %p151_p8 }
  0x1b   :  { %106 = vpow2.f32 %v37_v19  ;;  %v63_v26 = vmul.f32 1.442695, %v60_v20  ;;  %v69_v27 = vmul.f32 1.442695, %v66_v23 }
  0x1c   :  { %108 = vpow2.f32 %v33_v21 }
  0x1d   :  { %110 = vpow2.f32 %v39_v22 }
  0x1e   :  { %112 = vpow2.f32 %v61_v24 }
  0x1f   :  { %114 = vpow2.f32 %v67_v25 }
  0x20   :  { %116 = vpow2.f32 %v63_v26 }
  0x21   :  { %118 = vpow2.f32 %v69_v27 }
  0x24   :  { %v105_v28 = vpop.eup %104 }
  0x25   :  { %v107_v29 = vpop.eup %106 }
  0x26   :  { %v109_v30 = vpop.eup %108  ;;  %v41_v31 = vadd.f32 %v107_v29, %v105_v28 }
  0x27   :  { %v111_v32 = vpop.eup %110 }
  0x28   :  { %v113_v33 = vpop.eup %112  ;;  %120 = vrcp.f32 %v41_v31  ;;  %v42_v34 = vadd.f32 %v111_v32, %v109_v30 }
  0x29   :  { %v115_v35 = vpop.eup %114 }
  0x2a   :  { %v117_v36 = vpop.eup %116  ;;  %122 = vrcp.f32 %v42_v34  ;;  %v71_v37 = vadd.f32 %v115_v35, %v113_v33 }
  0x2b   :  { %v119_v38 = vpop.eup %118 }
  0x2c   :  { %124 = vrcp.f32 %v71_v37  ;;  %v72_v39 = vadd.f32 %v119_v38, %v117_v36 }
  0x2e   :  { %126 = vrcp.f32 %v72_v39 }
  0x32   :  { %v121_v40 = vpop.eup %120 }
  0x33   :  { %v45_v41 = vmul.f32 %v121_v40, %v105_v28  ;;  %v49_v42 = vmul.f32 %v121_v40, %v107_v29 }
  0x34   :  { %v123_v43 = vpop.eup %122 }
  0x35   :  { %47 = vst [vmem:[#allocation5] sm:$0xff] %v45_v41  ;;  %v46_v44 = vmul.f32 %v123_v43, %v109_v30  ;;  %51 = vst [vmem:[#allocation5 + $0x10] sm:$0xff] %v49_v42  ;;  %v50_v45 = vmul.f32 %v123_v43, %v111_v32 }
  0x36   :  { %v125_v46 = vpop.eup %124 }
  0x37   :  { %48 = vst [vmem:[#allocation5 + $0x20] sm:$0xff] %v46_v44  ;;  %52 = vst [vmem:[#allocation5 + $0x30] sm:$0xff] %v50_v45  ;;  %v75_v47 = vmul.f32 %v125_v46, %v113_v33  ;;  %v79_v48 = vmul.f32 %v125_v46, %v115_v35 }
  0x38   :  { %v127_v49 = vpop.eup %126 }
  0x39   :  { %77 = vst [vmem:[#allocation5 + $0x8] sm:$0xff] %v75_v47  ;;  %v76_v50 = vmul.f32 %v127_v49, %v117_v36  ;;  %81 = vst [vmem:[#allocation5 + $0x18] sm:$0xff] %v79_v48  ;;  %v80_v51 = vmul.f32 %v127_v49, %v119_v38 }
  0x3b   :  { %78 = vst [vmem:[#allocation5 + $0x28] sm:$0xff] %v76_v50  ;;  %82 = vst [vmem:[#allocation5 + $0x38] sm:$0xff] %v80_v51 }
  0x3c   :  { %161 = shalt.err (!%p158_p12)
}
  0x3d   :  { %s162_s24 = scalar_lea.hbm %s221_s1, 1024 }
  0x3e   :  { %p163_p13 = scmp.ne.s32.totalorder %s221_s1, %s162_s24  ;;  %p166_p0 = scmp.lt.u32.totalorder %s162_s24, %s221_s1 }
  0x40   :  { %p168_p1 = pnand %p166_p0, %p163_p13 }
  0x42   :  { %171 = shalt.err (!%p168_p1)
}
  0x43   :  { %94 = dma.vmem_to_hbm [thread:$0]  %s89_s20, 1024, %s221_s1, [#allocation4], %s177_s16, %s177_s16, %s178_s17  }
  0x44   :  { %174 = dma.done.wait [#allocation4], 1024  }
  0x45   :  { %175 = vsyncadd [#allocation4], 4294966272 }
  0x46   :  { %98 = vsyncpa [#allocation3], 1 }
  0x47   :  { %99 = vsyncpa [#allocation4], 1 }

</bundles_post_ra>
